<compile_context>
chip_gen: v6e
topology: v6e:2x2x1
jax: 0.10.0
libtpu: 0.0.40
codegen_flags: <defaults>
</compile_context>

<pallas_src>
import functools

import jax
import jax.numpy as jnp
from jax import lax
from jax.experimental import pallas as pl
from jax.experimental.pallas import tpu as pltpu


def _round_up(v, m):
    return ((v + m - 1) // m) * m


def _exposure_loss_kernel(x_ref, mw_ref, a_ref, o_ref, acc_ref, *,
                          mean_val, inv_total, n_imgs, bn):
    c = pl.program_id(0)
    n = pl.program_id(1)
    n_steps = pl.num_programs(1)

    @pl.when(n == 0)
    def _init():
        acc_ref[...] = jnp.zeros_like(acc_ref)

    # First image handled by this grid step (unclamped; used for tail masking).
    start = (c * n_steps + n) * bn

    def body(b, carry):
        xb = x_ref[b]                                         # (K, Wc) native dtype
        # W pooling on the MXU: (K, Wc) @ (Wc, Wp) -> (K, Wp), f32 accumulate.
        yb = jnp.dot(xb, mw_ref[...], preferred_element_type=jnp.float32)
        # H + channel pooling: (Wp, K) @ (K, Hp) -> (Wp, Hp), f32.
        pooled = jnp.dot(yb.T, a_ref[...], preferred_element_type=jnp.float32)
        sq = (pooled - mean_val) ** 2
        valid = (start + b) < n_imgs                          # mask phantom tail images
        return carry + jnp.where(valid, sq, jnp.zeros_like(sq))

    part = lax.fori_loop(0, bn, body, jnp.zeros(acc_ref.shape, acc_ref.dtype))
    acc_ref[...] += part

    @pl.when(n == n_steps - 1)
    def _finalize():
        s = jnp.sum(acc_ref[...]) * inv_total                 # single final reduce
        o_ref[...] = jnp.zeros_like(o_ref) + s                # lane-dense write


def exposure_loss(x, patch_size, mean_val):
    """x: (N, C, H, W) float array. Returns scalar loss (float32)."""
    N, C, H, W = x.shape
    P = int(patch_size)
    Hp, Wp = H // P, W // P                # AvgPool2d default: stride=kernel, floor mode
    assert Hp > 0 and Wp > 0, "patch_size larger than spatial dims"
    Hc, Wc = Hp * P, Wp * P
    K = C * Hc

    # Crop the floor-mode remainder (no-op when divisible) and fold channels
    # into the sublane axis: (N, C*Hc, Wc).  Contiguous -> no HBM copy for the
    # common divisible case.
    x2 = x[:, :, :Hc, :Wc].reshape(N, K, Wc)

    # Separable pooling matrices (tiny, batch-independent).
    w_pat = jnp.arange(Wc, dtype=jnp.int32) // P
    mw = (w_pat[:, None] == jnp.arange(Wp, dtype=jnp.int32)[None, :]).astype(x.dtype)
    h_pat = (jnp.arange(K, dtype=jnp.int32) % Hc) // P
    a_mat = ((h_pat[:, None] == jnp.arange(Hp, dtype=jnp.int32)[None, :])
             .astype(jnp.float32)) / float(C * P * P)

    # --- Padding-aware VMEM budgeting -------------------------------------
    itemsize = x.dtype.itemsize
    sub = 8 * max(1, 4 // itemsize)        # sublane tile: f32->8, bf16->16, int8->32
    per_img = _round_up(K, sub) * _round_up(Wc, 128) * itemsize
    mw_bytes = _round_up(Wc, sub) * _round_up(Wp, 128) * itemsize
    a_bytes = _round_up(K, 8) * _round_up(Hp, 128) * 4
    y_bytes = _round_up(K, 8) * 128 * 4                    # per-iteration intermediate
    acc_bytes = _round_up(Wp, 8) * _round_up(Hp, 128) * 4
    fixed = 2 * (mw_bytes + a_bytes) + y_bytes + acc_bytes + (4 << 20)

    try:
        phys = int(getattr(pltpu.get_tpu_info(), "vmem_capacity_bytes", 128 << 20))
    except Exception:
        phys = 128 << 20
    vmem_cap = min((phys * 3) // 4, 100 << 20)             # ~96 MiB v5e/v6e, ~48 MiB v7x

    per_buf = max(per_img, (vmem_cap - fixed) // 2)        # x is double-buffered
    bn_cap = max(1, per_buf // per_img)

    # Megacore split (v7x); a harmless sequential leading axis on v5e/v6e.
    NC = 2 if N >= 2 else 1
    Npc = pl.cdiv(N, NC)
    Bn = int(min(bn_cap, Npc))
    S = pl.cdiv(Npc, Bn)
    last_blk = pl.cdiv(N, Bn) - 1          # clamp target: never a fully-OOB DMA

    inv_total = 1.0 / float(N * Hp * Wp)
    kernel = functools.partial(_exposure_loss_kernel,
                               mean_val=float(mean_val),
                               inv_total=inv_total,
                               n_imgs=N, bn=Bn)

    cost = pl.CostEstimate(
        flops=int(N * (2 * K * Wc * Wp + 2 * K * Wp * Hp + 3 * Wp * Hp)),
        transcendentals=0,
        bytes_accessed=int(N * K * Wc * itemsize + (Wc * Wp + K * Hp) * 4
                           + NC * 128 * 4))

    vmem_limit = int(min(max(vmem_cap, fixed + 2 * Bn * per_img + (2 << 20)),
                         (phys * 9) // 10))

    out = pl.pallas_call(
        kernel,
        out_shape=jax.ShapeDtypeStruct((NC, 1, 128), jnp.float32),
        grid_spec=pltpu.PrefetchScalarGridSpec(
            num_scalar_prefetch=0,
            grid=(NC, S),
            in_specs=[
                pl.BlockSpec((Bn, K, Wc),
                             lambda c, n: (jnp.minimum(c * S + n, last_blk), 0, 0)),
                pl.BlockSpec((Wc, Wp), lambda c, n: (0, 0)),
                pl.BlockSpec((K, Hp), lambda c, n: (0, 0)),
            ],
            out_specs=pl.BlockSpec((1, 1, 128), lambda c, n: (c, 0, 0)),
            scratch_shapes=[pltpu.VMEM((Wp, Hp), jnp.float32)],
        ),
        compiler_params=pltpu.CompilerParams(
            dimension_semantics=("parallel", "arbitrary"),
            vmem_limit_bytes=vmem_limit),
        cost_estimate=cost,
    )(x2, mw, a_mat)

    # Each per-core partial is already scaled by 1/(N*Hp*Wp); sum them.
    return out[:, 0, 0].sum()


def _reference(x, patch_size, mean_val):
    """Pure-JAX reference matching the PyTorch module."""
    N, C, H, W = x.shape
    P = patch_size
    Hp, Wp = H // P, W // P
    cm = jnp.mean(x, axis=1, keepdims=True)                          # (N,1,H,W)
    cm = cm[:, :, :Hp * P, :Wp * P]
    pooled = cm.reshape(N, 1, Hp, P, Wp, P).mean(axis=(3, 5))        # (N,1,Hp,Wp)
    return jnp.mean((pooled - mean_val) ** 2)


if __name__ == "__main__":
    key = jax.random.PRNGKey(0)
    N, C, H, W = 2, 4, 16, 16
    patch_size = 4
    mean_val = 0.6

    x = jax.random.uniform(key, (N, C, H, W), dtype=jnp.float32)

    loss = exposure_loss(x, patch_size, mean_val)
    loss = jax.block_until_ready(loss)

    ref = jax.block_until_ready(_reference(x, patch_size, mean_val))
    assert jnp.allclose(loss, ref, rtol=1e-5, atol=1e-6), (loss, ref)

    print("KERNEL_OK")
</pallas_src>

<mosaic_0001>
module attributes {stable_mosaic.version = 11 : i64} {
  func.func @_exposure_loss_kernel(%arg0: i32, %arg1: i32, %arg2: memref<1x64x16xf32, #tpu.memory_space<vmem>>, %arg3: memref<16x4xf32, #tpu.memory_space<vmem>>, %arg4: memref<64x4xf32, #tpu.memory_space<vmem>>, %arg5: memref<1x1x128xf32, #tpu.memory_space<vmem>>, %arg6: memref<4x4xf32, #tpu.memory_space<vmem>>) attributes {dimension_semantics = [#tpu.dimension_semantics<parallel>, #tpu.dimension_semantics<arbitrary>], iteration_bounds = array<i64: 2, 1>, scalar_prefetch = 0 : i64, scratch_operands = 1 : i64, tpu.core_type = #tpu.core_type<tc>, window_params = [{transform_indices = @transform_0, window_bounds = array<i64: 1, 64, 16>}, {pipeline_mode = #tpu.pipeline_mode<synchronous>, transform_indices = @transform_1, window_bounds = array<i64: 16, 4>}, {pipeline_mode = #tpu.pipeline_mode<synchronous>, transform_indices = @transform_2, window_bounds = array<i64: 64, 4>}, {transform_indices = @transform_3, window_bounds = array<i64: 1, 1, 128>}]} {
    %c0_i32 = arith.constant 0 : i32
    %0 = arith.cmpi eq, %arg1, %c0_i32 : i32
    %1 = arith.extui %0 : i1 to i32
    %c0_i32_0 = arith.constant 0 : i32
    %2 = arith.cmpi ne, %1, %c0_i32_0 : i32
    scf.if %2 {
      %cst_19 = arith.constant 0.000000e+00 : f32
      %29 = vector.broadcast %cst_19 : f32 to vector<4x4xf32>
      %c0_20 = arith.constant 0 : index
      %c0_21 = arith.constant 0 : index
      %30 = vector.load %arg6[%c0_20, %c0_21] : memref<4x4xf32, #tpu.memory_space<vmem>>, vector<4x4xf32>
      tpu.vector_store %arg6[%c0_20, %c0_21], %29 {strides = array<i32>} : memref<4x4xf32, #tpu.memory_space<vmem>>, vector<4x4xf32>,
    } else {
    }
    %c1_i32 = arith.constant 1 : i32
    %3 = arith.muli %arg0, %c1_i32 : i32
    %4 = arith.addi %3, %arg1 : i32
    %c1_i32_1 = arith.constant 1 : i32
    %5 = arith.muli %4, %c1_i32_1 : i32
    %cst = arith.constant 0.000000e+00 : f32
    %6 = vector.broadcast %cst : f32 to vector<4x4xf32>
    %c0_i32_2 = arith.constant 0 : i32
    %7 = arith.index_cast %c0_i32_2 : i32 to index
    %c0 = arith.constant 0 : index
    %c0_3 = arith.constant 0 : index
    %8 = vector.load %arg2[%7, %c0, %c0_3] : memref<1x64x16xf32, #tpu.memory_space<vmem>>, vector<1x64x16xf32>
    %9 = vector.shape_cast %8 : vector<1x64x16xf32> to vector<64x16xf32>
    %c0_4 = arith.constant 0 : index
    %c0_5 = arith.constant 0 : index
    %10 = vector.load %arg3[%c0_4, %c0_5] : memref<16x4xf32, #tpu.memory_space<vmem>>, vector<16x4xf32>
    %cst_6 = arith.constant dense<0.000000e+00> : vector<64x4xf32>
    %11 = tpu.matmul %9, %10, %cst_6 {dimension_numbers = #tpu.dot_dimension_numbers<[1], [0], [0], [1], [0, 0, 1, 1], [], []>} : vector<64x16xf32>, vector<16x4xf32>, vector<64x4xf32> -> vector<64x4xf32>
    %12 = tpu.transpose %11, [1, 0] : vector<64x4xf32> -> vector<4x64xf32>
    %c0_7 = arith.constant 0 : index
    %c0_8 = arith.constant 0 : index
    %13 = vector.load %arg4[%c0_7, %c0_8] : memref<64x4xf32, #tpu.memory_space<vmem>>, vector<64x4xf32>
    %cst_9 = arith.constant dense<0.000000e+00> : vector<4x4xf32>
    %14 = tpu.matmul %12, %13, %cst_9 {dimension_numbers = #tpu.dot_dimension_numbers<[1], [0], [0], [1], [0, 0, 1, 1], [], []>} : vector<4x64xf32>, vector<64x4xf32>, vector<4x4xf32> -> vector<4x4xf32>
    %cst_10 = arith.constant 6.000000e-01 : f32
    %15 = vector.broadcast %cst_10 : f32 to vector<4x4xf32>
    %16 = arith.subf %14, %15 : vector<4x4xf32>
    %17 = arith.mulf %16, %16 : vector<4x4xf32>
    %18 = arith.addi %5, %c0_i32_2 : i32
    %c2_i32 = arith.constant 2 : i32
    %19 = arith.cmpi slt, %18, %c2_i32 : i32
    %cst_11 = arith.constant 0.000000e+00 : f32
    %20 = vector.broadcast %cst_11 : f32 to vector<4x4xf32>
    %21 = arith.select %19, %17, %20 : vector<4x4xf32>
    %22 = arith.addf %6, %21 : vector<4x4xf32>
    %c1_i32_12 = arith.constant 1 : i32
    %c0_13 = arith.constant 0 : index
    %c0_14 = arith.constant 0 : index
    %23 = vector.load %arg6[%c0_13, %c0_14] : memref<4x4xf32, #tpu.memory_space<vmem>>, vector<4x4xf32>
    %24 = arith.addf %23, %22 : vector<4x4xf32>
    %c0_15 = arith.constant 0 : index
    %c0_16 = arith.constant 0 : index
    %25 = vector.load %arg6[%c0_15, %c0_16] : memref<4x4xf32, #tpu.memory_space<vmem>>, vector<4x4xf32>
    tpu.vector_store %arg6[%c0_15, %c0_16], %24 {strides = array<i32>} : memref<4x4xf32, #tpu.memory_space<vmem>>, vector<4x4xf32>,
    %c0_i32_17 = arith.constant 0 : i32
    %26 = arith.cmpi eq, %arg1, %c0_i32_17 : i32
    %27 = arith.extui %26 : i1 to i32
    %c0_i32_18 = arith.constant 0 : i32
    %28 = arith.cmpi ne, %27, %c0_i32_18 : i32
    scf.if %28 {
      %c0_19 = arith.constant 0 : index
      %c0_20 = arith.constant 0 : index
      %29 = vector.load %arg6[%c0_19, %c0_20] : memref<4x4xf32, #tpu.memory_space<vmem>>, vector<4x4xf32>
      %30 = vector.shape_cast %29 : vector<4x4xf32> to vector<1x4x4xf32>
      %cst_21 = arith.constant dense<0.000000e+00> : vector<1xf32>
      %31 = vector.multi_reduction <add>, %30, %cst_21 [1, 2] : vector<1x4x4xf32> to vector<1xf32>
      %32 = vector.shape_cast %31 : vector<1xf32> to vector<1x1x1xf32>
      %33 = vector.extract %32[0, 0, 0] : f32 from vector<1x1x1xf32>
      %cst_22 = arith.constant 3.125000e-02 : f32
      %34 = arith.mulf %33, %cst_22 : f32
      %cst_23 = arith.constant 0.000000e+00 : f32
      %35 = vector.broadcast %cst_23 : f32 to vector<1x1x128xf32>
      %36 = vector.broadcast %34 : f32 to vector<1x1x128xf32>
      %37 = arith.addf %35, %36 : vector<1x1x128xf32>
      %c0_24 = arith.constant 0 : index
      %c0_25 = arith.constant 0 : index
      %c0_26 = arith.constant 0 : index
      %38 = vector.load %arg5[%c0_24, %c0_25, %c0_26] : memref<1x1x128xf32, #tpu.memory_space<vmem>>, vector<1x1x128xf32>
      tpu.vector_store %arg5[%c0_24, %c0_25, %c0_26], %37 {strides = array<i32>} : memref<1x1x128xf32, #tpu.memory_space<vmem>>, vector<1x1x128xf32>,
    } else {
    }
    return
  }
  func.func @transform_0(%arg0: i32, %arg1: i32) -> (i32, i32, i32) {
    %c1_i32 = arith.constant 1 : i32
    %0 = arith.muli %arg0, %c1_i32 : i32
    %1 = arith.addi %0, %arg1 : i32
    %c1_i32_0 = arith.constant 1 : i32
    %2 = arith.minsi %1, %c1_i32_0 : i32
    %c0_i32 = arith.constant 0 : i32
    %c0_i32_1 = arith.constant 0 : i32
    %c0_i32_2 = arith.constant 0 : i32
    return %2, %c0_i32, %c0_i32_1 : i32, i32, i32
  }
  func.func @transform_1(%arg0: i32, %arg1: i32) -> (i32, i32) {
    %c0_i32 = arith.constant 0 : i32
    %c0_i32_0 = arith.constant 0 : i32
    %c0_i32_1 = arith.constant 0 : i32
    return %c0_i32, %c0_i32_0 : i32, i32
  }
  func.func @transform_2(%arg0: i32, %arg1: i32) -> (i32, i32) {
    %c0_i32 = arith.constant 0 : i32
    %c0_i32_0 = arith.constant 0 : i32
    %c0_i32_1 = arith.constant 0 : i32
    return %c0_i32, %c0_i32_0 : i32, i32
  }
  func.func @transform_3(%arg0: i32, %arg1: i32) -> (i32, i32, i32) {
    %c0_i32 = arith.constant 0 : i32
    %c0_i32_0 = arith.constant 0 : i32
    %c0_i32_1 = arith.constant 0 : i32
    return %arg0, %c0_i32, %c0_i32_0 : i32, i32, i32
  }
}

</mosaic_0001>

<bundles_post_ra>
// kernel: tpu_custom_call.1
= control target key start
LH: loop header
LB: loop body
LE: loop exit
PB: predicated region body
PF: predicated region fallthrough
CT: control target
= control target key end

     0   :  { %8 = vsyncpa [#allocation4], 0  ;;  %s950_s0 = inlined_call_operand.vmem [shape: f32[2,64,16], index: 0, kind: input, shape index: {}]   ;;  %s951_s1 = inlined_call_operand.vmem [shape: f32[16,4], index: 1, kind: input, shape index: {}]   ;;  %s952_s2 = inlined_call_operand.vmem [shape: f32[64,4], index: 2, kind: input, shape index: {}]   ;;  %s953_s3 = inlined_call_operand.hbm [shape: f32[2,1,128], index: 3, kind: output, shape index: {}]  }
   0x1   :  { %10 = vsyncpa [#allocation4 + $0x1], 0  ;;  %s806_s12 = smov 0   ;;  %s808_s13 = smov 0  }
   0x2   :  { %s810_s14 = smov 0   ;;  %s812_s15 = smov 0  }
   0x3   :  { %s814_s16 = smov 0   ;;  %s816_s17 = smov 0  }
   0x4 LB: > { %s568_s18 = sadd.s32 4294967295, %s781_s17   ;;  %s569_s19 = sadd.s32 4294967294, %s781_s17   ;;  %s781_s17 = sphi %s816_s17, %s16_s17   ;;  %s777_s16 = sphi %s814_s16, %s960_s16   ;;  %s773_s15 = sphi %s812_s15, %s959_s15   ;;  %s769_s14 = sphi %s810_s14, %s958_s14   ;;  %s765_s13 = sphi %s808_s13, %s957_s13   ;;  %s761_s12 = sphi %s806_s12, %s956_s12  }
   0x5   : > { %s28_s20 = sadd.s32 1, %s777_s16  ;;  %s109_s21 = sadd.s32 1, %s769_s14 }
   0x6   : > { %p30_p0 = scmp.ge.s32.totalorder %s28_s20, 2  ;;  %p119_p1 = scmp.ne.s32.totalorder %s769_s14, %s765_s13 }
   0x7   : > { %p120_p2 = scmp.eq.s32.totalorder %s568_s18, 1  ;;  %p125_p3 = scmp.ne.s32.totalorder %s765_s13, %s761_s12 }
   0x8   : > { %s962_s20 = smov (%p30_p0, %s28_s20), 0  ;;  %p126_p5 = scmp.eq.s32.totalorder %s569_s19, 1 }
   0x9   : > { %p846_p4 = por %p120_p2, %p119_p1  ;;  %s106_s23 = ssub.s32 %s777_s16, %s962_s20 }
   0xa   : > { %p572_p6 = scmp.ge.s32.totalorder %s781_s17, 1  ;;  %p107_p7 = scmp.eq.s32.totalorder %s106_s23, 0 }
   0xb   : > { %p853_p8 = por %p126_p5, %p125_p3  ;;  %p164_p9 = scmp.lt.s32.totalorder %s781_s17, 3 }
   0xc   : > { %s859_s25 = scalar_select %p107_p7, %s769_s14, %s109_s21  }
   0xd   : > { %p165_p10 = pnand %p572_p6, %p164_p9 }
   0xe   : > { %p191_p11 = scmp.lt.s32.totalorder (!%p165_p10), %s773_s15, 1  ;;  %p464_p12 = scmp.lt.s32.totalorder (!%p165_p10), %s773_s15, 2 }
   0xf   : > { %168 = sbr.rel (%p165_p10) target bundleno = 772 (0x304), region = 32  ;;  %s188_s8 = sand.u32 (!%p165_p10), 1, %s765_s13  }
  0x10   : > { %s189_s9 = scalar_lea.vmem (!%p165_p10), [#allocation3], %s188_s8  ;;  %s588_s11 = sshll.u32 (!%p165_p10), %s773_s15, 4 }
  0x11   : > { %s505_s10 = sshll.u32 (!%p165_p10), %s189_s9, 4  ;;  %s910_s26 = scalar_lea.hbm (!%p165_p10), %s953_s3, %s588_s11  ;;  %s506_s10 = int_to_ptr.vmem [resolvable:$true] %s505_s10 }
  0x12   : > { %s493_s27 = scalar_lea.sflag (!%p165_p10), [#allocation4], %s188_s8  ;;  %s705_s28 = scalar_lea.vmem (!%p165_p10), %s506_s10, 16 }
  0x13   : > { %p706_p13 = scmp.ne.s32.totalorder (!%p165_p10), %s506_s10, %s705_s28  ;;  %s785_s29 = smov (!%p165_p10), [#allocation3]  }
  0x14   : > { %v217_v0 = vld [vmem:[%s951_s1 + $0x8] sm:$0xff]  ;;  %v216_v1 = vld [vmem:[%s951_s1] sm:$0xff]  ;;  %s192_s30 = scalar_select %p191_p11, %s773_s15, 1  ;;  %vm218_vm0 = vcmask 130048   ;;  %v387_v10 = vld [vmem:[%s952_s2 + $0x38] sm:$0xff]  ;;  %v783_v11 = vmov 0.0  }
  0x15   : > { %611 = vmatprep.subr.mxu0 %v217_v0  ;;  %627 = vmatprep.subr.mxu1 %v783_v11  ;;  %v386_v12 = vld [vmem:[%s952_s2 + $0x30] sm:$0xff]  ;;  %vm784_vm1 = vmmov 0   ;;  %v385_v13 = vld [vmem:[%s952_s2 + $0x28] sm:$0xff]  ;;  %v384_v14 = vld [vmem:[%s952_s2 + $0x20] sm:$0xff]  ;;  %vm388_vm2 = vcmask 523264   ;;  %vm205_vm3 = vcmask 27648   ;;  %p707_p0 = pnand %p706_p13, %p846_p4 }
  0x16   : > { %612 = vmatpush3.msra.mxu0 %v217_v0  ;;  %s964_s30 = smov (!%p191_p11, %s192_s30), 1  ;;  %643 = vmatprep.mubr.msk.f32.mxu1 %vm784_vm1, %v783_v11  ;;  %v383_v15 = vld [vmem:[%s952_s2 + $0x18] sm:$0xff]  ;;  %v382_v16 = vld [vmem:[%s952_s2 + $0x10] sm:$0xff]  ;;  %v381_v17 = vld [vmem:[%s952_s2 + $0x8] sm:$0xff]  ;;  %206 = vst.msk [vmem:[#allocation2] sm:$0xf] %vm205_vm3, %v783_v11 }
  0x17   : > { %613 = vmatprep.subr.mxu0 %v216_v1  ;;  %s591_s4 = sshll.u32 %s964_s30, 6  ;;  %628 = vmatpush3.msra.mxu1 %v387_v10  ;;  %v380_v18 = vld [vmem:[%s952_s2] sm:$0xff]  ;;  %p708_p1 = pneg %p707_p0 }
  0x18   : > { %614 = vmatpush3.msra.mxu0 %v216_v1  ;;  %s197_s7 = scalar_lea.vmem %s950_s0, %s591_s4  ;;  %629 = vmatprep.subr.mxu1 %v783_v11  ;;  %s709_s30 = sshll.u32 %s785_s29, 4  ;;  %s710_s30 = int_to_ptr.vmem [resolvable:$false] %s709_s30 }
  0x19   : > { %v208_v2 = vld [vmem:[%s197_s7] sm:$0xff]  ;;  %v209_v3 = vld [vmem:[%s197_s7 + $0x8] sm:$0xff]  ;;  %v210_v4 = vld [vmem:[%s197_s7 + $0x10] sm:$0xff]  ;;  %630 = vmatpush3.msra.mxu1 %v386_v12  ;;  %s711_s15 = scalar_lea.vmem %s710_s30, 32  ;;  %p712_p2 = scmp.lt.s32.totalorder %s506_s10, %s710_s30 }
  0x1a   : > { %615 = vmatprep.mubr.msk.f32.mxu0 %vm218_vm0, %v208_v2  ;;  %v211_v5 = vld [vmem:[%s197_s7 + $0x18] sm:$0xff]  ;;  %v212_v6 = vld [vmem:[%s197_s7 + $0x20] sm:$0xff]  ;;  %v213_v7 = vld [vmem:[%s197_s7 + $0x28] sm:$0xff]  ;;  %631 = vmatprep.subr.mxu1 %v783_v11  ;;  %p713_p3 = scmp.lt.s32.totalorder %s711_s15, %s705_s28 }
  0x1b   : > { %616 = vmatmul.mubr.msk.f32.vlgmr.msra.gmra.mxu0 %vm218_vm0, %v209_v3  ;;  %v214_v8 = vld [vmem:[%s197_s7 + $0x30] sm:$0xff]  ;;  %v215_v9 = vld [vmem:[%s197_s7 + $0x38] sm:$0xff]  ;;  %632 = vmatpush3.msra.mxu1 %v385_v13  ;;  %s465_s7 = scalar_select %p464_p12, 1, 0 }
  0x1c   : > { %618 = vmatprep.mubr.msk.f32.mxu0 %vm218_vm0, %v210_v4  ;;  %633 = vmatprep.subr.mxu1 %v783_v11  ;;  %p714_p5 = por %p713_p3, %p712_p2 }
  0x1d   : > { %634 = vmatpush3.msra.mxu1 %v384_v14  ;;  %v466_v28 = vstv %s465_s7  ;;  %v470_v33 = vld [vmem:[#allocation2] sm:$0xf] }
  0x1e   : > { %635 = vmatprep.subr.mxu1 %v783_v11  ;;  %vm467_vm4 = vcmp.eq.s32.totalorder %v466_v28, 1  ;;  %p715_p6 = pnand %p714_p5, %p708_p1 }
  0x1f   : > { %619 = vmatmul.mubr.msk.f32.gmra.mxu0 %vm218_vm0, %v211_v5  ;;  %636 = vmatpush3.msra.mxu1 %v383_v15 }
  0x20   : > { %621 = vmatprep.mubr.msk.f32.mxu0 %vm218_vm0, %v212_v6  ;;  %637 = vmatprep.subr.mxu1 %v783_v11 }
  0x21   : > { %638 = vmatpush3.msra.mxu1 %v382_v16 }
  0x22   : > { %639 = vmatprep.subr.mxu1 %v783_v11 }
  0x23   : > { %622 = vmatmul.mubr.msk.f32.gmra.mxu0 %vm218_vm0, %v213_v7  ;;  %640 = vmatpush3.msra.mxu1 %v381_v17 }
  0x24   : > { %624 = vmatprep.mubr.msk.f32.mxu0 %vm218_vm0, %v214_v8  ;;  %641 = vmatprep.subr.mxu1 %v783_v11 }
  0x25   : > { %642 = vmatpush3.msra.mxu1 %v380_v18 }
  0x27   : > { %625 = vmatmul.mubr.msk.f32.gmra.mxu0 %vm218_vm0, %v215_v9 }
  0xdb   : > { %v617_v19 = vpop.f32.mrf.mxu0 }
  0xdd   : > { %v309_v20 = vpop.f32.mrf.mxu0 }
  0xde   : > { %348 = vxpose.xlu0.b32.start [1/8] (short) (narrow) %v309_v20, 8 }
  0xdf   : > { %v620_v21 = vpop.f32.mrf.mxu0 }
  0xe1   : > { %v319_v22 = vpop.f32.mrf.mxu0 }
  0xe2   : > { %349 = vxpose.xlu0.b32.cont [2/8] (short) (narrow) %v617_v19, 8 }
  0xe3   : > { %v623_v23 = vpop.f32.mrf.mxu0 }
  0xe5   : > { %v329_v24 = vpop.f32.mrf.mxu0 }
  0xe6   : > { %350 = vxpose.xlu0.b32.cont [3/8] (short) (narrow) %v319_v22, 8 }
  0xe7   : > { %v626_v25 = vpop.f32.mrf.mxu0 }
  0xe9   : > { %v339_v26 = vpop.f32.mrf.mxu0 }
  0xea   : > { %351 = vxpose.xlu0.b32.cont [4/8] (short) (narrow) %v620_v21, 8 }
  0xee   : > { %352 = vxpose.xlu0.b32.cont [5/8] (short) (narrow) %v329_v24, 8 }
  0xf2   : > { %353 = vxpose.xlu0.b32.cont [6/8] (short) (narrow) %v623_v23, 8 }
  0xf6   : > { %354 = vxpose.xlu0.b32.cont [7/8] (short) (narrow) %v339_v26, 8 }
  0xfa   : > { %355 = vxpose.xlu0.b32.end [8/8] (short) (narrow) %v626_v25, 8 }
 0x15a   : > { %v364_v27 = vpop.trf.xlu0 }
 0x15b   : > { %644 = vmatmul.mubr.msk.f32.vlgmr.msra.gmra.mxu1 %vm388_vm2, %v364_v27 }
 0x21b   : > { %v458_v29 = vpop.f32.mrf.mxu1 }
 0x21c   : > { %v587_v30 = vadd.f32 -0.6, %v458_v29 }
 0x21d   : > { %v645_v31 = vpop.f32.mrf.mxu1 }
 0x21e   : > { %v463_v32 = vmul.f32 %v587_v30, %v587_v30 }
 0x220   : > { %v468_v34 = vsel %vm467_vm4, %v463_v32, 0.0 }
 0x221   : > { %v471_v35 = vadd.f32 %v470_v33, %v468_v34 }
 0x223   : > { %473 = vst.msk [vmem:[#allocation2] sm:$0xf] %vm205_vm3, %v471_v35 }
 0x22a   : > { %v477_v36 = vld [vmem:[#allocation2] sm:$0xf] }
 0x22b   : > { %v478_v37 = vsel %vm205_vm3, %v477_v36, 0.0 }
 0x22c   : > { %479 = vadd.xlane.f32.xlu1 %v478_v37 }
 0x2b5   : > { %v480_v38 = vpop.xlane.xlu1 %479 }
 0x2b6   : > { %v481_v39 = vrot.slane %v480_v38, 4 }
 0x2b8   : > { %v482_v40 = vadd.f32 %v481_v39, %v480_v38 }
 0x2ba   : > { %v483_v41 = vrot.slane %v482_v40, 2 }
 0x2bc   : > { %v484_v42 = vadd.f32 %v483_v41, %v482_v40 }
 0x2be   : > { %v485_v43 = vrot.slane %v484_v42, 1 }
 0x2c0   : > { %v486_v44 = vadd.f32 %v485_v43, %v484_v42 }
 0x2c2   : > { %646 = vpush %v486_v44 }
 0x2f3   : > { %s647_s18 = spop %646 }
 0x2f4   : > { %s488_s19 = smul.f32 0.03125, %s647_s18 }
 0x2f6   : > { %v489_v45 = vstv %s488_s19 }
 0x2f7   : > { %491 = vst [vmem:[%s189_s9] sm:$0x1] %v489_v45 }
 0x2f8   : > { %718 = shalt.err (!%p715_p6)
}
 0x2f9   : > { %s719_s4 = scalar_lea.hbm %s910_s26, 16  ;;  %s723_s7 = scalar_lea.hbm %s953_s3, 32 }
 0x2fa   : > { %p720_p7 = scmp.ne.s32.totalorder %s910_s26, %s719_s4  ;;  %p724_p11 = scmp.lt.s32.totalorder %s910_s26, %s953_s3 }
 0x2fb   : > { %p725_p12 = scmp.lt.s32.totalorder %s723_s7, %s719_s4 }
 0x2fc   : > { %p721_p9 = pnand %p720_p7, %p846_p4 }
 0x2fd   : > { %p726_p13 = por %p725_p12, %p724_p11 }
 0x2fe   : > { %p722_p10 = pneg %p721_p9 }
 0x300   : > { %p727_p0 = pnand %p726_p13, %p722_p10 }
 0x302   : > { %730 = shalt.err (!%p727_p0)
}
 0x303   : > { %648 = dma.vmem_to_hbm [thread:$0]  (%p846_p4), %s506_s10, 16, %s910_s26, %s493_s27  }
 0x304 PF: > { %p654_p1 = scmp.ge.s32.totalorder %s781_s17, 2  ;;  %s517_s11 = sand.u32 1, %s761_s12  }
 0x305   : > { %s518_s18 = scalar_lea.sflag [#allocation4], %s517_s11 }
 0x306   : > { %p651_p2 = pnand %p654_p1, %p853_p8 }
 0x308   : > { %p652_p3 = pneg %p651_p2 }
 0x30a   : > { %756 = dma.done.wait (%p652_p3), %s518_s18, 16  }
 0x30b   : > { %758 = vsyncadd (%p652_p3), %s518_s18, 4294967280  ;;  %s16_s17 = sadd.s32 1, %s781_s17   ;;  %s956_s12 = smov %s765_s13 }
 0x30c   : > { %p13_p5 = scmp.ge.s32.totalorder %s16_s17, 4   ;;  %s957_s13 = smov %s769_s14 }
 0x30d   : > { %s958_s14 = smov %s859_s25  ;;  %s959_s15 = smov %s777_s16 }
 0x30e   : > { %s960_s16 = smov %s962_s20  ;;  %15 = sbr.rel (!%p13_p5) target bundleno = 4 (0x4), region = 75 }
 0x313   :  { %522 = vsyncpa [#allocation4], 1 }
 0x314   :  { %524 = vsyncpa [#allocation4 + $0x1], 1 }

</bundles_post_ra>
